<compile_context>
chip_gen: v5e
topology: v5e:2x2
jax: 0.10.0
libtpu: 0.0.40
codegen_flags: <defaults>
</compile_context>

<pallas_src>
import math

import jax
import jax.numpy as jnp
from jax.experimental import pallas as pl
from jax.experimental.pallas import tpu as pltpu


def _rope_kernel(inv_ref, off_ref, out_ref):
    """Writes one (block_rows, width) tile of the lane-folded freqs table.

    For an element at (sub, lane) of this block:
        t (original row) = (base + sub) * fold + lane // dim
        out              = t * inv_freq[(lane % dim) % (dim//2)]
                         = (base + sub) * scaled_inv[lane] + off[lane]
    where scaled_inv = fold * inv_freq (exact: fold is a power of two) and
    off = (lane // dim) * inv_freq are precomputed host-side row tables.
    """
    block_rows, _ = out_ref.shape
    base = pl.program_id(0) * block_rows
    sub = jax.lax.broadcasted_iota(jnp.int32, out_ref.shape, 0)
    row = (sub + base).astype(jnp.float32)
    out_ref[...] = row * inv_ref[...] + off_ref[...]


def _choose_block_rows(rows: int, width: int) -> int:
    """Rows per grid step: big tiles, multiple of 8, even grid-step count."""
    # ~16 MiB per output tile; double-buffered (~32 MiB) this fits every
    # generation (v7x: 64 MiB physical VMEM) with headroom.
    tile_budget_bytes = 16 * 1024 * 1024
    bytes_per_row = width * 4
    cap = max(8, (tile_budget_bytes // bytes_per_row) // 8 * 8)

    if rows <= 8:
        return rows  # tiny: single full-extent block is legal and cheapest
    if rows <= 2 * cap:
        # Exactly 2 grid steps so v7x's two TensorCores each take ~half
        # (store-bound => ~2x there; negligible overhead on v5e/v6e).
        return min(cap, ((pl.cdiv(rows, 2) + 7) // 8) * 8)
    # Many steps: keep the step count even so the 2-TC split stays balanced.
    n_steps = pl.cdiv(rows, cap)
    n_steps += n_steps % 2
    return ((pl.cdiv(rows, n_steps) + 7) // 8) * 8


def rotary_embedding(seq_len: int, dim: int) -> jax.Array:
    """Returns freqs of shape (seq_len, dim), float32 (== the PyTorch module)."""
    assert dim % 2 == 0
    # Row index must stay exactly representable in f32; callers beyond this
    # would silently lose integer precision.
    assert seq_len < (1 << 24)
    half = dim // 2

    # Lane-dense folding: pack `fold` consecutive rows into one lane-dense row
    # so the output width is always a multiple of 128 (unmasked full vst).
    # Pure relayout; the row-major bytes are identical to the unfolded table.
    fold = 128 // math.gcd(dim, 128)
    width = dim * fold
    rows = pl.cdiv(seq_len, fold)  # pad the tail; extra rows sliced off below

    # Host-side lane tables (tiny; the PyTorch module keeps inv_freq as a
    # buffer the same way).  scaled_inv = fold * inv_freq is exact (power of 2).
    lane = jnp.arange(width, dtype=jnp.int32)
    j = lane % dim
    jm = jnp.where(j >= half, j - half, j)
    k = lane // dim
    inv_freq = 1.0 / (10000.0 ** (2.0 * jm.astype(jnp.float32) / dim))
    scaled_inv = (inv_freq * float(fold)).reshape(1, width)
    off = (k.astype(jnp.float32) * inv_freq).reshape(1, width)

    block_rows = _choose_block_rows(rows, width)
    grid = (pl.cdiv(rows, block_rows),)

    out = pl.pallas_call(
        _rope_kernel,
        out_shape=jax.ShapeDtypeStruct((rows, width), jnp.float32),
        grid=grid,
        in_specs=[
            pl.BlockSpec((1, width), lambda i: (0, 0)),
            pl.BlockSpec((1, width), lambda i: (0, 0)),
        ],
        out_specs=pl.BlockSpec((block_rows, width), lambda i: (i, 0)),
        compiler_params=pltpu.CompilerParams(
            dimension_semantics=("parallel",),
            # 2 x ~16 MiB output buffers + slack; above v5e's 16 MiB scoped
            # default, comfortably under every generation's physical VMEM.
            vmem_limit_bytes=48 * 1024 * 1024,
        ),
    )(scaled_inv, off)

    # Undo the lane-dense fold (row-major bytes already in the right order)
    # and drop the padded tail rows.
    return out.reshape(rows * fold, dim)[:seq_len]


def _reference(seq_len: int, dim: int) -> jax.Array:
    inv_freq = 1.0 / (10000.0 ** (jnp.arange(0, dim, 2, dtype=jnp.float32) / dim))
    t = jnp.arange(seq_len, dtype=jnp.float32)
    freqs = jnp.einsum("i,j->ij", t, inv_freq)
    return jnp.concatenate([freqs, freqs], axis=-1)


if __name__ == "__main__":
    # deterministic example setup (key unused for values; output is index-only)
    key = jax.random.PRNGKey(0)
    del key

    cases = [
        (8, 32),    # module's small case: fold=4, single tiny block
        (10, 32),   # seq not a multiple of fold -> padded rows + slice
        (256, 64),  # fold=2, two grid steps (exercises pipelining / 2 TCs)
        (48, 128),  # dim already lane-aligned (fold=1), two grid steps
        (20, 96),   # dim not a divisor of 128 -> gcd-based fold=4, width=384
    ]

    for seq_len, dim in cases:
        out = jax.block_until_ready(rotary_embedding(seq_len, dim))
        ref = _reference(seq_len, dim)
        assert out.shape == (seq_len, dim), (seq_len, dim)
        assert out.dtype == jnp.float32
        assert jnp.allclose(out, ref, atol=1e-6, rtol=1e-5), (seq_len, dim)

    print("KERNEL_OK")
</pallas_src>

<mosaic_0001>
module attributes {stable_mosaic.version = 11 : i64} {
  func.func @_rope_kernel(%arg0: i32, %arg1: memref<1x128xf32, #tpu.memory_space<vmem>>, %arg2: memref<1x128xf32, #tpu.memory_space<vmem>>, %arg3: memref<2x128xf32, #tpu.memory_space<vmem>>) attributes {dimension_semantics = [#tpu.dimension_semantics<parallel>], iteration_bounds = array<i64: 1>, scalar_prefetch = 0 : i64, scratch_operands = 0 : i64, tpu.core_type = #tpu.core_type<tc>, window_params = [{pipeline_mode = #tpu.pipeline_mode<synchronous>, transform_indices = @transform_0, window_bounds = array<i64: 1, 128>}, {pipeline_mode = #tpu.pipeline_mode<synchronous>, transform_indices = @transform_1, window_bounds = array<i64: 1, 128>}, {transform_indices = @transform_2, window_bounds = array<i64: 2, 128>}]} {
    %c2_i32 = arith.constant 2 : i32
    %0 = arith.muli %arg0, %c2_i32 : i32
    %1 = tpu.iota {dimensions = array<i32: 0>} : vector<2x128xi32>
    %2 = vector.broadcast %0 : i32 to vector<2x128xi32>
    %3 = arith.addi %1, %2 : vector<2x128xi32>
    %4 = arith.sitofp %3 : vector<2x128xi32> to vector<2x128xf32>
    %c0 = arith.constant 0 : index
    %c0_0 = arith.constant 0 : index
    %5 = vector.load %arg1[%c0, %c0_0] : memref<1x128xf32, #tpu.memory_space<vmem>>, vector<1x128xf32>
    %6 = vector.broadcast %5 : vector<1x128xf32> to vector<2x128xf32>
    %7 = arith.mulf %4, %6 : vector<2x128xf32>
    %c0_1 = arith.constant 0 : index
    %c0_2 = arith.constant 0 : index
    %8 = vector.load %arg2[%c0_1, %c0_2] : memref<1x128xf32, #tpu.memory_space<vmem>>, vector<1x128xf32>
    %9 = vector.broadcast %8 : vector<1x128xf32> to vector<2x128xf32>
    %10 = arith.addf %7, %9 : vector<2x128xf32>
    %c0_3 = arith.constant 0 : index
    %c0_4 = arith.constant 0 : index
    %11 = vector.load %arg3[%c0_3, %c0_4] : memref<2x128xf32, #tpu.memory_space<vmem>>, vector<2x128xf32>
    tpu.vector_store %arg3[%c0_3, %c0_4], %10 {strides = array<i32>} : memref<2x128xf32, #tpu.memory_space<vmem>>, vector<2x128xf32>,
    return
  }
  func.func @transform_0(%arg0: i32) -> (i32, i32) {
    %c0_i32 = arith.constant 0 : i32
    %c0_i32_0 = arith.constant 0 : i32
    %c0_i32_1 = arith.constant 0 : i32
    return %c0_i32, %c0_i32_0 : i32, i32
  }
  func.func @transform_1(%arg0: i32) -> (i32, i32) {
    %c0_i32 = arith.constant 0 : i32
    %c0_i32_0 = arith.constant 0 : i32
    %c0_i32_1 = arith.constant 0 : i32
    return %c0_i32, %c0_i32_0 : i32, i32
  }
  func.func @transform_2(%arg0: i32) -> (i32, i32) {
    %c0_i32 = arith.constant 0 : i32
    %c0_i32_0 = arith.constant 0 : i32
    return %arg0, %c0_i32 : i32, i32
  }
}

</mosaic_0001>

<bundles_post_ra>
// kernel: tpu_custom_call.1
= control target key start
LH: loop header
LB: loop body
LE: loop exit
PB: predicated region body
PF: predicated region fallthrough
CT: control target
= control target key end

     0   :  { %7 = vsyncpa [#allocation3], 0  ;;  %s185_s0 = inlined_call_operand.hbm [shape: f32[1,128], index: 0, kind: input, shape index: {}]   ;;  %s186_s1 = inlined_call_operand.hbm [shape: f32[1,128], index: 1, kind: input, shape index: {}]   ;;  %s187_s2 = inlined_call_operand.hbm [shape: f32[2,128], index: 2, kind: output, shape index: {}]  }
   0x1   :  { %8 = vsyncpa [#allocation6], 0 }
   0x2   :  { %9 = vsyncpa [#allocation4], 0  ;;  %s15_s11 = sshll.u32 %s185_s0, 4  ;;  %s158_s12 = smov [#allocation2]   ;;  %s16_s11 = int_to_ptr.hbm [resolvable:$true] %s15_s11 }
   0x3   :  { %s17_s13 = sshll.u32 %s158_s12, 4  ;;  %s26_s16 = sshll.u32 %s186_s1, 4  ;;  %s18_s13 = int_to_ptr.vmem [resolvable:$true] %s17_s13  ;;  %s27_s16 = int_to_ptr.hbm [resolvable:$true] %s26_s16 }
   0x4   :  { %20 = dma.hbm_to_vmem [thread:$0]  %s16_s11, 16, %s18_s13, [#allocation3]  }
   0x5   :  { %s159_s17 = smov [#allocation5]  }
   0x6   :  { %s28_s18 = sshll.u32 %s159_s17, 4  ;;  %s29_s18 = int_to_ptr.vmem [resolvable:$true] %s28_s18 }
   0x7   :  { %31 = dma.hbm_to_vmem [thread:$0]  %s27_s16, 16, %s29_s18, [#allocation6]  }
   0x8   :  { %152 = dma.done.wait [#allocation3], 16  }
   0x9   :  { %153 = vsyncadd [#allocation3], 4294967280 }
   0xa   :  { %154 = dma.done.wait [#allocation6], 16  }
   0xb   :  { %155 = vsyncadd [#allocation6], 4294967280  ;;  %v41_v0 = vlaneseq  ;;  %v78_v3 = vld [vmem:[#allocation2] ss:$0 sm:$0xff]  ;;  %v79_v4 = vld [vmem:[#allocation5] ss:$0 sm:$0xff] }
   0xc   :  { %s160_s0 = smov [#allocation7]   ;;  %s64_s1 = sshll.u32 %s187_s2, 4  ;;  %s65_s1 = int_to_ptr.hbm [resolvable:$true] %s64_s1 }
   0xd   :  { %v42_v1 = vshrl.u32 %v41_v0, 7  ;;  %s62_s19 = sshll.u32 %s160_s0, 4  ;;  %s63_s19 = int_to_ptr.vmem [resolvable:$true] %s62_s19 }
   0xf   :  { %v45_v2 = vcvt.s32.f32 %v42_v1 }
  0x11   :  { %v50_v5 = vmul.f32 %v78_v3, %v45_v2 }
  0x13   :  { %v55_v6 = vadd.f32 %v79_v4, %v50_v5 }
  0x15   :  { %56 = vst [vmem:[#allocation7] sm:$0x3] %v55_v6 }
  0x16   :  { %67 = dma.vmem_to_hbm [thread:$0]  %s63_s19, 32, %s65_s1, [#allocation4]  }
  0x17   :  { %156 = dma.done.wait [#allocation4], 32  }
  0x18   :  { %157 = vsyncadd [#allocation4], 4294967264 }
  0x19   :  { %72 = vsyncpa [#allocation3], 1 }
  0x1a   :  { %73 = vsyncpa [#allocation6], 1 }
  0x1b   :  { %74 = vsyncpa [#allocation4], 1 }

</bundles_post_ra>
